<compile_context>
chip_gen: v7x
topology: tpu7x:2x2x1
jax: 0.10.0
libtpu: 0.0.40
codegen_flags: <defaults>
</compile_context>

<pallas_src>
import math
import functools
import numpy as np
import jax
import jax.numpy as jnp
from jax.experimental import pallas as pl
from jax.experimental.pallas import tpu as pltpu

F32 = jnp.float32
BF16 = jnp.bfloat16


# ----------------------------- Pallas kernels ------------------------------

def _dense_kernel(x_ref, w_ref, b_ref, o_ref, *, act):
    y = jnp.dot(x_ref[...].astype(BF16), w_ref[...],
                preferred_element_type=F32) + b_ref[...]
    if act == "relu":
        y = jnp.maximum(y, 0.0)
    o_ref[...] = y


def _dense_call(x2d, w, b, act="linear"):
    """y = act(x @ w + b).  x2d: (M, K) f32, w: (K, N) bf16, b: (N,) f32."""
    M = x2d.shape[0]
    N = w.shape[1]
    return pl.pallas_call(
        functools.partial(_dense_kernel, act=act),
        out_shape=jax.ShapeDtypeStruct((M, N), F32),
    )(x2d.astype(F32), w, b.reshape(1, N).astype(F32))


def _mlp2_kernel(x_ref, w1_ref, b1_ref, w2_ref, b2_ref, o_ref):
    h = jnp.dot(x_ref[...].astype(BF16), w1_ref[...],
                preferred_element_type=F32) + b1_ref[...]
    h = jnp.maximum(h, 0.0)
    o_ref[...] = jnp.dot(h.astype(BF16), w2_ref[...],
                         preferred_element_type=F32) + b2_ref[...]


def _mlp2_call(x2d, w1, b1, w2, b2):
    """Fused linear1(relu) + linear2(linear) head/tail MLP."""
    M = x2d.shape[0]
    N = w2.shape[1]
    return pl.pallas_call(
        _mlp2_kernel,
        out_shape=jax.ShapeDtypeStruct((M, N), F32),
    )(x2d.astype(F32), w1, b1.reshape(1, -1).astype(F32),
      w2, b2.reshape(1, -1).astype(F32))


def _lstm_seq_kernel(x_ref, wih_ref, whh_ref, b_ref, o_ref):
    # x_ref: (T, B, D) f32; wih_ref: (D, 4Hp) bf16; whh_ref: (Hp, 4Hp) bf16;
    # b_ref: (1, 4Hp) f32; o_ref: (T, B, Hp) f32.  Fused gate layout [i|f|o|g].
    T, B, D = x_ref.shape
    Hp = o_ref.shape[2]
    # Hoisted input projection: one (T*B, D) x (D, 4Hp) matmul outside the loop.
    xg = jnp.dot(x_ref[...].reshape(T * B, D).astype(BF16), wih_ref[...],
                 preferred_element_type=F32) + b_ref[...]
    xg = xg.reshape(T, B, 4 * Hp)

    def step(t, carry):
        h, c = carry
        g = xg[t] + jnp.dot(h.astype(BF16), whh_ref[...],
                            preferred_element_type=F32)
        sig = jax.nn.sigmoid(g[:, :3 * Hp])        # one fused slab for i,f,o
        i_g = sig[:, :Hp]
        f_g = sig[:, Hp:2 * Hp]
        o_g = sig[:, 2 * Hp:3 * Hp]
        g_g = jnp.tanh(g[:, 3 * Hp:])
        c_new = f_g * c + i_g * g_g
        h_new = o_g * jnp.tanh(c_new)
        o_ref[t] = h_new
        return (h_new, c_new)

    jax.lax.fori_loop(0, T, step,
                      (jnp.zeros((B, Hp), F32), jnp.zeros((B, Hp), F32)))


def _lstm_seq_call(x_tbd, wih, whh, b):
    """x_tbd: (T, B, D) time-major -> all hidden states (T, B, Hp); zero init."""
    T, B, _ = x_tbd.shape
    Hp = whh.shape[0]
    return pl.pallas_call(
        _lstm_seq_kernel,
        out_shape=jax.ShapeDtypeStruct((T, B, Hp), F32),
    )(x_tbd.astype(F32), wih, whh, b.reshape(1, -1))


def _lstm_last_kernel(x_ref, lens_ref, wih_ref, whh_ref, b_ref, o_ref):
    # Packed-sequence emulation: write h only at each user's last valid step.
    # x_ref: (T, U, D); lens_ref: (U, 1) int32; o_ref: (U, H).
    T, U, D = x_ref.shape
    H = o_ref.shape[1]
    xg = jnp.dot(x_ref[...].reshape(T * U, D).astype(BF16), wih_ref[...],
                 preferred_element_type=F32) + b_ref[...]
    xg = xg.reshape(T, U, 4 * H)
    o_ref[...] = jnp.zeros_like(o_ref)
    lens = lens_ref[...]

    def step(t, carry):
        h, c = carry
        g = xg[t] + jnp.dot(h.astype(BF16), whh_ref[...],
                            preferred_element_type=F32)
        sig = jax.nn.sigmoid(g[:, :3 * H])
        i_g = sig[:, :H]
        f_g = sig[:, H:2 * H]
        o_g = sig[:, 2 * H:3 * H]
        g_g = jnp.tanh(g[:, 3 * H:])
        c_new = f_g * c + i_g * g_g
        h_new = o_g * jnp.tanh(c_new)
        is_last = lens == (t + 1)                          # (U, 1)
        o_ref[...] = jnp.where(is_last, h_new, o_ref[...])
        return (h_new, c_new)

    jax.lax.fori_loop(0, T, step,
                      (jnp.zeros((U, H), F32), jnp.zeros((U, H), F32)))


def _lstm_last_call(x_tud, lens, wih, whh, b):
    T, U, _ = x_tud.shape
    H = whh.shape[0]
    lens_arr = jnp.asarray(lens, jnp.int32).reshape(U, 1)
    return pl.pallas_call(
        _lstm_last_kernel,
        out_shape=jax.ShapeDtypeStruct((U, H), F32),
    )(x_tud.astype(F32), lens_arr, wih, whh, b.reshape(1, -1))


def _mha_kernel(x_ref, wqkv_ref, bqkv_ref, wo_ref, bo_ref, o_ref,
                *, h, d, dv, scale):
    # Fused self-attention MHA: QKV proj -> per-head SDPA -> output proj ->
    # mean over queries (the reference follows each MHA with .mean(dim=1)).
    x = x_ref[0].astype(BF16)                               # (n, dm_in)
    qkv = jnp.dot(x, wqkv_ref[...], preferred_element_type=F32) + bqkv_ref[...]
    hd = h * d
    heads = []
    for head in range(h):
        qh = qkv[:, head * d:(head + 1) * d]
        kh = qkv[:, hd + head * d:hd + (head + 1) * d]
        vh = qkv[:, 2 * hd + head * dv:2 * hd + (head + 1) * dv]
        att = jax.lax.dot_general(qh.astype(BF16), kh.astype(BF16),
                                  (((1,), (1,)), ((), ())),
                                  preferred_element_type=F32) * scale
        att = jax.nn.softmax(att, axis=-1)
        # TODO(synk): attention dropout (p=0.1) treated as inference-mode identity.
        heads.append(jnp.dot(att.astype(BF16), vh.astype(BF16),
                             preferred_element_type=F32))
    o_cat = jnp.concatenate(heads, axis=-1)                 # (n, h*dv)
    out = jnp.dot(o_cat.astype(BF16), wo_ref[...],
                  preferred_element_type=F32) + bo_ref[...]
    o_ref[...] = jnp.mean(out, axis=0, keepdims=True)       # (1, dm_out)


def _mha_self_mean_call(x, p):
    """x: (B, n, dm_in); returns mean over queries of MHA(x, x, x): (B, dm_out)."""
    B, n, dm_in = x.shape
    h, d, dv = p["h"], p["d"], p["d_v"]
    wdim = p["wqkv"].shape[1]
    dm_out = p["wo"].shape[1]
    kernel = functools.partial(_mha_kernel, h=h, d=d, dv=dv,
                               scale=1.0 / math.sqrt(d))
    return pl.pallas_call(
        kernel,
        out_shape=jax.ShapeDtypeStruct((B, dm_out), F32),
        grid=(B,),
        in_specs=[
            pl.BlockSpec((1, n, dm_in), lambda b: (b, 0, 0)),
            pl.BlockSpec((dm_in, wdim), lambda b: (0, 0)),
            pl.BlockSpec((1, wdim), lambda b: (0, 0)),
            pl.BlockSpec((h * dv, dm_out), lambda b: (0, 0)),
            pl.BlockSpec((1, dm_out), lambda b: (0, 0)),
        ],
        out_specs=pl.BlockSpec((1, dm_out), lambda b: (b, 0)),
        compiler_params=pltpu.CompilerParams(
            dimension_semantics=("parallel",)),
    )(x.astype(F32), p["wqkv"], p["bqkv"].reshape(1, -1),
      p["wo"], p["bo"].reshape(1, -1))


def _group_sdpa_kernel(c_ref, f_ref, s_ref, m_ref, o_ref, *, scale):
    # Per-role ScaledDotProductAttention, one grid step per role, masked keys.
    q = c_ref[0].astype(BF16)                                # (1, F)
    k = f_ref[0].astype(BF16)                                # (nu, F)
    v = s_ref[0]                                             # (nu, S)
    att = jax.lax.dot_general(q, k, (((1,), (1,)), ((), ())),
                              preferred_element_type=F32) * scale
    att = jax.nn.softmax(att + m_ref[0], axis=-1)
    # TODO(synk): SDPA dropout (p=0.1) treated as inference-mode identity.
    o_ref[0] = jnp.dot(att.astype(BF16), v.astype(BF16),
                       preferred_element_type=F32)


def _group_sdpa_call(centers, feats, sentis, mask):
    """centers (G,1,F), feats (G,nu,F), sentis (G,nu,S), mask (G,1,nu) -> (G,1,S)."""
    G, nu, Fdim = feats.shape
    S = sentis.shape[2]
    kernel = functools.partial(_group_sdpa_kernel, scale=1.0 / math.sqrt(Fdim))
    return pl.pallas_call(
        kernel,
        out_shape=jax.ShapeDtypeStruct((G, 1, S), F32),
        grid=(G,),
        in_specs=[
            pl.BlockSpec((1, 1, Fdim), lambda g: (g, 0, 0)),
            pl.BlockSpec((1, nu, Fdim), lambda g: (g, 0, 0)),
            pl.BlockSpec((1, nu, S), lambda g: (g, 0, 0)),
            pl.BlockSpec((1, 1, nu), lambda g: (g, 0, 0)),
        ],
        out_specs=pl.BlockSpec((1, 1, S), lambda g: (g, 0, 0)),
        compiler_params=pltpu.CompilerParams(
            dimension_semantics=("parallel",)),
    )(centers.astype(F32), feats.astype(F32), sentis.astype(F32),
      mask.astype(F32))


# ----------------------------- parameter init ------------------------------

def _xavier(key, shape):
    fan_in, fan_out = shape
    lim = math.sqrt(6.0 / (fan_in + fan_out))
    return jax.random.uniform(key, shape, F32, -lim, lim)


def _lstm_params(key, in_dim, hidden, in_pad=None, hidden_pad=None):
    """Fused-gate LSTM weights.  Gate layout [i | f | o | g] (sigmoid slab first).
    Zero-padding of in_dim/hidden is semantics-preserving (padded h stays 0)."""
    in_pad = in_dim if in_pad is None else in_pad
    hidden_pad = hidden if hidden_pad is None else hidden_pad
    kk = 1.0 / math.sqrt(hidden)
    ks = jax.random.split(key, 3)
    wih = jax.random.uniform(ks[0], (4, in_dim, hidden), F32, -kk, kk)
    whh = jax.random.uniform(ks[1], (4, hidden, hidden), F32, -kk, kk)
    b = jax.random.uniform(ks[2], (2, 4, hidden), F32, -kk, kk).sum(0)  # b_ih + b_hh

    def pad_gate(w, rows, cols):
        return jnp.pad(w, ((0, 0), (0, rows - w.shape[1]), (0, cols - w.shape[2])))

    wih_p = pad_gate(wih, in_pad, hidden_pad)
    whh_p = pad_gate(whh, hidden_pad, hidden_pad)
    b_p = jnp.pad(b, ((0, 0), (0, hidden_pad - hidden)))
    order = (0, 1, 3, 2)                                     # i, f, o, g
    return dict(
        wih=jnp.concatenate([wih_p[i] for i in order], axis=1).astype(BF16),
        whh=jnp.concatenate([whh_p[i] for i in order], axis=1).astype(BF16),
        b=jnp.concatenate([b_p[i] for i in order], axis=0),  # (4*hidden_pad,)
    )


def _mha_params(key, d_model, d, d_v, h, d_model_pad=None):
    """nn.Linear init: normal(std=0.001), bias 0.  Q|K|V fused along the output
    dim; input rows zero-padded to d_model_pad (consumes lane-padded inputs)."""
    dmp = d_model if d_model_pad is None else d_model_pad
    ks = jax.random.split(key, 4)
    wq = 0.001 * jax.random.normal(ks[0], (d_model, h * d), F32)
    wk = 0.001 * jax.random.normal(ks[1], (d_model, h * d), F32)
    wv = 0.001 * jax.random.normal(ks[2], (d_model, h * d_v), F32)
    wo = 0.001 * jax.random.normal(ks[3], (h * d_v, d_model), F32)
    wqkv = jnp.pad(jnp.concatenate([wq, wk, wv], axis=1),
                   ((0, dmp - d_model), (0, 0))).astype(BF16)
    return dict(wqkv=wqkv, bqkv=jnp.zeros((h * (2 * d + d_v),), F32),
                wo=wo.astype(BF16), bo=jnp.zeros((d_model,), F32),
                h=h, d=d, d_v=d_v)


# ----------------------------- module forwards -----------------------------

def _user_forward(up, hist_tud, hist_lens, user_vec, cluster_center, cluster_id):
    # hist_tud: (Tmax, U, skep) time-major, padded histories of selected users.
    U = hist_tud.shape[1]
    h_last = _lstm_last_call(hist_tud, hist_lens, up["lstm"]["wih"],
                             up["lstm"]["whh"], up["lstm"]["b"])   # (U, senti)
    senti = h_last.shape[1]
    feat = user_vec.shape[1]

    # Host-side role grouping (defaultdict first-occurrence order).
    roles, seen = [], set()
    for cid in cluster_id:
        if cid not in seen:
            seen.add(cid)
            roles.append(cid)
    groups = [[i for i in range(U) if cluster_id[i] == r] for r in roles]
    G = len(roles)
    max_u = max(len(g) for g in groups)

    feats = np.zeros((G, max_u, feat), np.float32)
    mask = np.full((G, 1, max_u), -1e30, np.float32)
    gather = np.zeros((G, max_u), np.int32)
    user_vec_np = np.asarray(user_vec)
    for gi, g in enumerate(groups):
        gather[gi, :len(g)] = g
        mask[gi, 0, :len(g)] = 0.0
        feats[gi, :len(g)] = user_vec_np[g]
    centers = np.asarray(cluster_center)[np.asarray(roles)][:, None, :]  # (G,1,F)

    sentis = h_last[jnp.asarray(gather)]                      # (G, max_u, senti)
    role_senti = _group_sdpa_call(jnp.asarray(centers), jnp.asarray(feats),
                                  sentis, jnp.asarray(mask))  # (G, 1, senti)
    role_senti = role_senti.reshape(1, G, senti)
    # Fused role MultiHeadAttention + mean over roles (public_senti).
    return _mha_self_mean_call(role_senti, up["role_attn"])   # (1, senti)


def ours_v2_forward(params, x, topic, user_inputs):
    B, T, in_dim = x.shape
    bert_dim = topic.shape[-1]
    # Fused series/topic embeddings: block-diagonal weight yields [relu(s)|relu(t)].
    xt = jnp.concatenate([x.reshape(B * T, in_dim),
                          topic.reshape(B * T, bert_dim)], axis=-1)
    st = _dense_call(xt, params["head_w"], params["head_b"], act="relu")
    st = st.reshape(B, T, -1).transpose(1, 0, 2)              # (T, B, 640); free at B=1
    st = _lstm_seq_call(st, params["lstm1"]["wih"], params["lstm1"]["whh"],
                        params["lstm1"]["b"])
    st = _lstm_seq_call(st, params["lstm2"]["wih"], params["lstm2"]["whh"],
                        params["lstm2"]["b"])
    st = jnp.transpose(st, (1, 0, 2))                         # (B, T, Hp); free at B=1
    # TODO(synk): reference assigns the (out, att) tuple to s_t then calls .mean()
    # (errors in torch); we use the attention output — the only sensible reading.
    st = _mha_self_mean_call(st, params["lstm_attn"])         # (B, hidden)
    u = _user_forward(params["user"], *user_inputs)           # (1, senti)
    out = jnp.concatenate([st, u], axis=-1)                   # requires B == 1
    # TODO(synk): linear1 dropout p=0.2 treated as inference-mode identity.
    out = _mlp2_call(out, params["lin1_w"], params["lin1_b"],
                     params["lin2_w"], params["lin2_b"])
    return out


# ---------------------------------- main ------------------------------------

if __name__ == "__main__":
    # args (small, synthetic)
    input_size, bert_size, output_size = 16, 32, 1
    skep_size, k_roles = 32, 3
    series_emb_size, topic_emb_size = 128, 512
    hidden_size, hidden_pad = 60, 128      # 60 padded to a lane-dense 128 internally
    senti_size = 128
    feat_dim = 16
    B, T = 1, 8                            # USER branch yields batch 1 -> cat needs B == 1

    root = jax.random.PRNGKey(0)
    ki = iter(jax.random.split(root, 64))
    nk = lambda: next(ki)

    series_w = _xavier(nk(), (input_size, series_emb_size))
    topic_w = _xavier(nk(), (bert_size, topic_emb_size))
    head_w = jnp.zeros((input_size + bert_size,
                        series_emb_size + topic_emb_size), F32)
    head_w = head_w.at[:input_size, :series_emb_size].set(series_w)
    head_w = head_w.at[input_size:, series_emb_size:].set(topic_w)

    params = dict(
        head_w=head_w.astype(BF16),
        head_b=jnp.zeros((series_emb_size + topic_emb_size,), F32),
        lstm1=_lstm_params(nk(), series_emb_size + topic_emb_size, hidden_size,
                           hidden_pad=hidden_pad),
        lstm2=_lstm_params(nk(), hidden_size, hidden_size,
                           in_pad=hidden_pad, hidden_pad=hidden_pad),
        lstm_attn=_mha_params(nk(), d_model=hidden_size, d=64, d_v=64, h=1,
                              d_model_pad=hidden_pad),
        user=dict(
            lstm=_lstm_params(nk(), skep_size, senti_size),
            role_attn=_mha_params(nk(), d_model=senti_size, d=64, d_v=64, h=2),
        ),
        lin1_w=_xavier(nk(), (hidden_size + senti_size, hidden_size)).astype(BF16),
        lin1_b=jnp.zeros((hidden_size,), F32),
        lin2_w=_xavier(nk(), (hidden_size, output_size)).astype(BF16),
        lin2_b=jnp.zeros((output_size,), F32),
    )

    # ---- inputs ----
    x = jax.random.normal(nk(), (B, T, input_size), F32)
    topic = jax.random.normal(nk(), (B, T, bert_size), F32)

    # Synthetic stand-in for the .npy cluster / text-embed files used by USER.
    num_users = 6
    cluster_id = [0, 1, 2, 0, 1, 2]        # all users selected
    user_vec = jax.random.normal(nk(), (num_users, feat_dim), F32)
    cluster_center = jax.random.normal(nk(), (k_roles, feat_dim), F32)

    raw_lens = [3, 0, 5, 2, 4, 1]          # one empty history -> single zero vector
    eff_lens = [max(L, 1) for L in raw_lens]
    max_len = max(eff_lens)
    hist_rows = []
    for L in raw_lens:
        if L == 0:
            hrow = jnp.zeros((1, skep_size), F32)
        else:
            hrow = jax.random.normal(nk(), (L, skep_size), F32)
        hist_rows.append(jnp.pad(hrow, ((0, max_len - hrow.shape[0]), (0, 0))))
    hist_padded = jnp.stack(hist_rows, axis=0)                # (U, Tmax, skep)
    hist_tud = jnp.transpose(hist_padded, (1, 0, 2))          # (Tmax, U, skep)

    user_inputs = (hist_tud, eff_lens, user_vec, cluster_center, cluster_id)

    out = ours_v2_forward(params, x, topic, user_inputs)
    out = jax.block_until_ready(out)
    assert out.shape == (B, output_size), out.shape
    assert bool(jnp.all(jnp.isfinite(out)))
    print("KERNEL_OK")
</pallas_src>

<mosaic_0001>
module attributes {stable_mosaic.version = 11 : i64} {
  func.func @_dense_kernel(%arg0: memref<8x48xf32, #tpu.memory_space<vmem>>, %arg1: memref<48x640xbf16, #tpu.memory_space<vmem>>, %arg2: memref<1x640xf32, #tpu.memory_space<vmem>>, %arg3: memref<8x640xf32, #tpu.memory_space<vmem>>) attributes {dimension_semantics = [], scalar_prefetch = 0 : i64, scratch_operands = 0 : i64, tpu.core_type = #tpu.core_type<tc>} {
    %c0 = arith.constant 0 : index
    %c0_0 = arith.constant 0 : index
    %0 = vector.load %arg0[%c0, %c0_0] : memref<8x48xf32, #tpu.memory_space<vmem>>, vector<8x48xf32>
    %1 = arith.truncf %0 : vector<8x48xf32> to vector<8x48xbf16>
    %c0_1 = arith.constant 0 : index
    %c0_2 = arith.constant 0 : index
    %2 = vector.load %arg1[%c0_1, %c0_2] : memref<48x640xbf16, #tpu.memory_space<vmem>>, vector<48x640xbf16>
    %cst = arith.constant dense<0.000000e+00> : vector<8x640xf32>
    %3 = tpu.matmul %1, %2, %cst {dimension_numbers = #tpu.dot_dimension_numbers<[1], [0], [0], [1], [0, 0, 1, 1], [], []>} : vector<8x48xbf16>, vector<48x640xbf16>, vector<8x640xf32> -> vector<8x640xf32>
    %c0_3 = arith.constant 0 : index
    %c0_4 = arith.constant 0 : index
    %4 = vector.load %arg2[%c0_3, %c0_4] : memref<1x640xf32, #tpu.memory_space<vmem>>, vector<1x640xf32>
    %5 = vector.broadcast %4 : vector<1x640xf32> to vector<8x640xf32>
    %6 = arith.addf %3, %5 : vector<8x640xf32>
    %cst_5 = arith.constant 0.000000e+00 : f32
    %7 = vector.broadcast %cst_5 : f32 to vector<8x640xf32>
    %8 = arith.maximumf %6, %7 : vector<8x640xf32>
    %c0_6 = arith.constant 0 : index
    %c0_7 = arith.constant 0 : index
    %9 = vector.load %arg3[%c0_6, %c0_7] : memref<8x640xf32, #tpu.memory_space<vmem>>, vector<8x640xf32>
    tpu.vector_store %arg3[%c0_6, %c0_7], %8 {strides = array<i32>} : memref<8x640xf32, #tpu.memory_space<vmem>>, vector<8x640xf32>,
    return
  }
}

</mosaic_0001>

<bundles_post_ra>
// kernel: tpu_custom_call.1
= control target key start
LH: loop header
LB: loop body
LE: loop exit
PB: predicated region body
PF: predicated region fallthrough
CT: control target
= control target key end

     0   :  { %8 = vsyncpa [#allocation3], 0  ;;  %s529_s0 = inlined_call_operand.hbm [shape: f32[8,48], index: 0, kind: input, shape index: {}]   ;;  %s530_s1 = inlined_call_operand.hbm [shape: bf16[48,640], index: 1, kind: input, shape index: {}]   ;;  %s531_s2 = inlined_call_operand.vmem [shape: f32[1,640], index: 2, kind: input, shape index: {}]   ;;  %s532_s3 = inlined_call_operand.hbm [shape: f32[8,640], index: 3, kind: output, shape index: {}]  }
   0x1   :  { %9 = vsyncpa [#allocation6], 0 }
   0x2   :  { %10 = vsyncpa [#allocation4], 0  ;;  %s452_s12 = smov [#allocation2]   ;;  %s453_s14 = smov [#allocation5]  }
   0x3   :  { %s17_s13 = sshll.u32 %s452_s12, 4  ;;  %s26_s15 = sshll.u32 %s453_s14, 4  ;;  %s18_s13 = int_to_ptr.vmem [resolvable:$true] %s17_s13  ;;  %s480_s15 = int_to_ptr.vmem [resolvable:$true] %s26_s15 }
   0x4   :  { %s380_s18 = scalar_lea.hbm %s529_s0, 128 }
   0x5   :  { %p381_p0 = scmp.ne.s32.totalorder %s529_s0, %s380_s18  ;;  %p384_p1 = scmp.lt.u32.totalorder %s380_s18, %s529_s0 }
   0x7   :  { %p386_p2 = pnand %p384_p1, %p381_p0 }
   0x9   :  { %389 = shalt.err (!%p386_p2)
}
   0xa   :  { %s390_s23 = scalar_lea.vmem %s18_s13, 128  ;;  %p395_p4 = scmp.lt.s32.totalorder %s18_s13, %s18_s13 }
   0xb   :  { %p391_p3 = scmp.ne.s32.totalorder %s18_s13, %s390_s23  ;;  %p396_p5 = scmp.lt.s32.totalorder %s390_s23, %s390_s23 }
   0xd   :  { %p397_p6 = por %p396_p5, %p395_p4 }
   0xf   :  { %p398_p7 = pnand %p397_p6, %p391_p3 }
  0x11   :  { %401 = shalt.err (!%p398_p7)
}
  0x12   :  { %20 = dma.hbm_to_vmem [thread:$0]  %s529_s0, 128, %s18_s13, [#allocation3]  }
  0x13   :  { %s402_s28 = scalar_lea.hbm %s530_s1, 1920 }
  0x14   :  { %p403_p8 = scmp.ne.s32.totalorder %s530_s1, %s402_s28  ;;  %p406_p9 = scmp.lt.u32.totalorder %s402_s28, %s530_s1 }
  0x16   :  { %p408_p10 = pnand %p406_p9, %p403_p8 }
  0x18   :  { %411 = shalt.err (!%p408_p10)
}
  0x19   :  { %s412_s6 = scalar_lea.vmem %s480_s15, 1920  ;;  %p417_p12 = scmp.lt.s32.totalorder %s480_s15, %s480_s15 }
  0x1a   :  { %p413_p11 = scmp.ne.s32.totalorder %s480_s15, %s412_s6  ;;  %p418_p13 = scmp.lt.s32.totalorder %s412_s6, %s412_s6 }
  0x1c   :  { %p419_p0 = por %p418_p13, %p417_p12 }
  0x1e   :  { %p420_p1 = pnand %p419_p0, %p413_p11 }
  0x20   :  { %423 = shalt.err (!%p420_p1)
}
  0x21   :  { %s454_s0 = smov 320   ;;  %s455_s7 = smov 20  }
  0x22   :  { %32 = dma.hbm_to_vmem [thread:$0]  %s530_s1, 1920, %s480_s15, [#allocation6], %s454_s0, %s454_s0, %s455_s7  }
  0x23   :  { %446 = dma.done.wait [#allocation3], 128  }
  0x24   :  { %447 = vsyncadd [#allocation3], 4294967168 }
  0x25   :  { %448 = dma.done.wait [#allocation6], 1920  }
  0x26   :  { %449 = vsyncadd [#allocation6], 4294965376  ;;  %v456_v0 = vmov 0   ;;  %v359_v1 = vld [vmem:[#allocation5 + $0x4] ss:$20 sps:$4 sm:$0xff]   ;;  %vm167_vm0 = vcmask 392192   ;;  %v64_v19 = vlaneseq }
  0x27   :  { %203 = vmatprep.mubr.bf16.mxu0 %v456_v0  ;;  %244 = vmatprep.mubr.bf16.mxu1 %v456_v0  ;;  %v361_v2 = vld [vmem:[#allocation5] ss:$20 sps:$4 sm:$0xff]   ;;  %v364_v4 = vld [vmem:[#allocation5 + $0x28] ss:$20 sps:$4 sm:$0xff]   ;;  %v369_v7 = vld [vmem:[#allocation5 + $0x50] ss:$20 sps:$4 sm:$0xff]  }
  0x28   :  { %171 = vmatprep.subr.bf16.mxu0 %v359_v1  ;;  %v362_v3 = vld [vmem:[#allocation5 + $0x2c] ss:$20 sps:$4 sm:$0xff]   ;;  %v365_v5 = vld [vmem:[#allocation5 + $0x54] ss:$20 sps:$4 sm:$0xff]   ;;  %v42_v9 = vld [vmem:[#allocation2] sm:$0xff]  ;;  %v457_v16 = vmov 0.0  }
  0x29   :  { %172 = vmatpush1.bf16.msra.mxu0 %v361_v2  ;;  %v367_v6 = vld [vmem:[#allocation5 + $0xc] ss:$20 sps:$4 sm:$0xff]   ;;  %v370_v8 = vld [vmem:[#allocation5 + $0x8] ss:$20 sps:$4 sm:$0xff]   ;;  %v373_v11 = vld [vmem:[#allocation5 + $0x30] ss:$20 sps:$4 sm:$0xff]   ;;  %v43_v13 = vpack.c.bf16 %v42_v9, %v42_v9 }
  0x2a   :  { %173 = vmatprep.subr.bf16.mxu0 %v362_v3  ;;  %212 = vmatprep.subr.bf16.mxu1 %v367_v6  ;;  %v371_v10 = vld [vmem:[#allocation5 + $0x34] ss:$20 sps:$4 sm:$0xff]   ;;  %v375_v12 = vld [vmem:[#allocation5 + $0x5c] ss:$20 sps:$4 sm:$0xff]   ;;  %v377_v15 = vld [vmem:[#allocation5 + $0x58] ss:$20 sps:$4 sm:$0xff]  }
  0x2b   :  { %213 = vmatpush1.bf16.msra.mxu1 %v370_v8  ;;  %v374_v14 = vld [vmem:[#allocation5 + $0x10] ss:$20 sps:$4 sm:$0xff]   ;;  %v378_v17 = vld [vmem:[#allocation5 + $0x38] ss:$20 sps:$4 sm:$0xff]   ;;  %vm458_vm1 = vmmov 0   ;;  %v65_v20 = vshrl.u32 %v64_v19, 7 }
  0x2c   :  { %214 = vmatprep.subr.bf16.mxu1 %v371_v10  ;;  %v379_v18 = vld [vmem:[#allocation5 + $0x60] ss:$20 sps:$4 sm:$0xff]   ;;  %v62_v22 = vld [vmem:[%s531_s2] sm:$0x1f]  ;;  %s459_s2 = smov [#allocation7]  }
  0x2d   :  { %174 = vmatpush1.bf16.msra.mxu0 %v364_v4  ;;  %v66_v21 = vsub.s32 0, %v65_v20  ;;  %v70_v23 = vsub.s32 1, %v65_v20  ;;  %v74_v25 = vsub.s32 2, %v65_v20  ;;  %v78_v27 = vsub.s32 3, %v65_v20  ;;  %s309_s11 = sshll.u32 %s459_s2, 4  ;;  %s310_s11 = int_to_ptr.vmem [resolvable:$true] %s309_s11 }
  0x2e   :  { %175 = vmatprep.subr.bf16.mxu0 %v365_v5  ;;  %v82_v41 = vsub.s32 4, %v65_v20  ;;  %s424_s12 = scalar_lea.vmem %s310_s11, 640  ;;  %p429_p3 = scmp.lt.s32.totalorder %s310_s11, %s310_s11 }
  0x2f   :  { %215 = vmatpush1.bf16.msra.mxu1 %v373_v11  ;;  %v67_v24 = vrot.slane %v62_v22, %v66_v21  ;;  %v71_v26 = vrot.slane %v62_v22, %v70_v23  ;;  %v75_v31 = vrot.slane %v62_v22, %v74_v25  ;;  %v79_v34 = vrot.slane %v62_v22, %v78_v27  ;;  %p425_p2 = scmp.ne.s32.totalorder %s310_s11, %s424_s12  ;;  %p430_p4 = scmp.lt.s32.totalorder %s424_s12, %s424_s12 }
  0x30   :  { %216 = vmatprep.subr.bf16.mxu1 %v375_v12  ;;  %v83_v47 = vrot.slane %v62_v22, %v82_v41 }
  0x31   :  { %176 = vmatpush1.bf16.msra.mxu0 %v369_v7  ;;  %p431_p5 = por %p430_p4, %p429_p3 }
  0x32   :  { %341 = vmatprep.subr.bf16.mxu0 %v457_v16 }
  0x33   :  { %217 = vmatpush1.bf16.msra.mxu1 %v377_v15  ;;  %p432_p6 = pnand %p431_p5, %p425_p2 }
  0x34   :  { %334 = vmatmul.mubr.msk.bf16.vlgmr.msra.gmra.mrb[0].mxu0 %vm167_vm0, %v43_v13 }
  0x35   :  { %342 = vmatpush3.bf16.msra.mxu0 %v374_v14  ;;  %347 = vmatprep.mubr.msk.bf16.mxu0 %vm458_vm1, %v457_v16 }
  0x36   :  { %343 = vmatprep.subr.bf16.mxu0 %v457_v16  ;;  %335 = vmatmul.mubr.msk.bf16.vlgmr.msra.gmra.mrb[0].mxu1 %vm167_vm0, %v43_v13 }
  0x39   :  { %344 = vmatpush3.bf16.msra.mxu0 %v378_v17 }
  0x3a   :  { %345 = vmatprep.subr.bf16.mxu0 %v457_v16 }
  0x3d   :  { %346 = vmatpush3.bf16.msra.mxu0 %v379_v18 }
  0x40   :  { %348 = vmatmul.mubr.msk.bf16.vlgmr.msra.gmra.mrb[4].mxu0 %vm167_vm0, %v43_v13 }
 0x107   :  { %v205_v28 = vpop.f32.mrb[0].mxu0 }
 0x108   :  { %v206_v29 = vadd.f32 %v205_v28, %v67_v24  ;;  %v207_v30 = vpop.f32.mrb[1].mxu0 }
 0x109   :  { %v208_v32 = vadd.f32 %v207_v30, %v71_v26  ;;  %v209_v33 = vpop.f32.mrb[2].mxu0  ;;  %v246_v38 = vpop.f32.mrb[0].mxu1 }
 0x10a   :  { %v293_v35 = vmax.f32 %v206_v29, 0.0  ;;  %v210_v36 = vpop.f32.mrb[3].mxu0  ;;  %v247_v39 = vadd.f32 %v246_v38, %v75_v31  ;;  %v248_v40 = vpop.f32.mrb[1].mxu1 }
 0x10b   :  { %v294_v37 = vmax.f32 %v208_v32, 0.0  ;;  %v249_v42 = vadd.f32 %v248_v40, %v79_v34  ;;  %v250_v43 = vpop.f32.mrb[2].mxu1 }
 0x10c   :  { %298 = vst [vmem:[#allocation7] sm:$0xff] %v293_v35  ;;  %v295_v44 = vmax.f32 %v247_v39, 0.0  ;;  %v251_v45 = vpop.f32.mrb[3].mxu1 }
 0x10d   :  { %299 = vst [vmem:[#allocation7 + $0x8] sm:$0xff] %v294_v37  ;;  %v296_v46 = vmax.f32 %v249_v42, 0.0 }
 0x10e   :  { %300 = vst [vmem:[#allocation7 + $0x10] sm:$0xff] %v295_v44 }
 0x10f   :  { %301 = vst [vmem:[#allocation7 + $0x18] sm:$0xff] %v296_v46 }
 0x113   :  { %v287_v48 = vpop.f32.mrb[4].mxu0 }
 0x114   :  { %v288_v49 = vadd.f32 %v287_v48, %v83_v47  ;;  %v349_v50 = vpop.f32.mrb[5].mxu0 }
 0x115   :  { %v290_v51 = vpop.f32.mrb[6].mxu0 }
 0x116   :  { %v297_v52 = vmax.f32 %v288_v49, 0.0  ;;  %v350_v53 = vpop.f32.mrb[7].mxu0 }
 0x118   :  { %302 = vst [vmem:[#allocation7 + $0x20] sm:$0xff] %v297_v52 }
 0x119   :  { %435 = shalt.err (!%p432_p6)
}
 0x11a   :  { %s436_s15 = scalar_lea.hbm %s532_s3, 640 }
 0x11b   :  { %p437_p7 = scmp.ne.s32.totalorder %s532_s3, %s436_s15  ;;  %p440_p8 = scmp.lt.u32.totalorder %s436_s15, %s532_s3 }
 0x11d   :  { %p442_p9 = pnand %p440_p8, %p437_p7 }
 0x11f   :  { %445 = shalt.err (!%p442_p9)
}
 0x120   :  { %312 = dma.vmem_to_hbm [thread:$0]  %s310_s11, 640, %s532_s3, [#allocation4]  }
 0x121   :  { %450 = dma.done.wait [#allocation4], 640  }
 0x122   :  { %451 = vsyncadd [#allocation4], 4294966656 }
 0x123   :  { %316 = vsyncpa [#allocation3], 1 }
 0x124   :  { %317 = vsyncpa [#allocation6], 1 }
 0x125   :  { %318 = vsyncpa [#allocation4], 1 }

</bundles_post_ra>
